<compile_context>
chip_gen: v5e
topology: v5e:2x2
jax: 0.10.0
libtpu: 0.0.40
codegen_flags: <defaults>
</compile_context>

<pallas_src>
import functools

import jax
import jax.numpy as jnp
import numpy as np
from jax import lax
from jax.experimental import pallas as pl
from jax.experimental.pallas import tpu as pltpu

_NEG = -1e9  # fill value for padded class columns / padded batch rows


def _ldam_kernel(x_ref, tgt_ref, m_ref, out_ref, *, s):
    """One batch tile: write the per-sample LDAM cross-entropy losses."""
    x = x_ref[...].astype(jnp.float32)        # (TILE_N, C_pad)
    tgt = tgt_ref[...]                        # (TILE_N, 1) int32
    m = m_ref[...]                            # (1, C_pad) float32

    # One-hot of target (equivalent of torch scatter_ into a bool mask).
    classes = lax.broadcasted_iota(jnp.int32, x.shape, 1)
    index = classes == tgt                    # (TILE_N, C_pad)

    # output = where(index, x - m[target], x) == x - where(index, m, 0)
    z = jnp.float32(s) * (x - jnp.where(index, m, jnp.float32(0.0)))

    # Stable log-sum-exp; padded class columns hold s * (-1e9) so exp == 0.
    zmax = jnp.max(z, axis=1, keepdims=True)
    lse = jnp.log(jnp.sum(jnp.exp(z - zmax), axis=1, keepdims=True)) + zmax
    z_tgt = jnp.sum(jnp.where(index, z, jnp.float32(0.0)), axis=1, keepdims=True)

    out_ref[...] = lse - z_tgt                # (TILE_N, 1) per-sample NLL


def ldam_loss_pallas(x, target, m_list, s=30.0):
    """x: (N, C) float logits; target: (N,) int; m_list: (C,) float32."""
    n, c = x.shape

    # Lane-dense class axis: pad C up to a multiple of 128.
    c_pad = ((c + 127) // 128) * 128

    # Tile the batch axis; keep each (double-buffered) logits tile <= ~8 MiB
    # so the pipeline fits comfortably in scoped VMEM on v5e/v6e/v7x.
    itemsize = jnp.dtype(x.dtype).itemsize
    tile_n = (8 * 1024 * 1024) // (c_pad * itemsize)
    tile_n = max(8, min(1024, (tile_n // 8) * 8))
    tile_n = min(tile_n, ((n + 7) // 8) * 8)      # don't over-pad tiny batches
    n_pad = ((n + tile_n - 1) // tile_n) * tile_n

    # Pad: extra class columns / batch rows -> very negative logits (exp == 0),
    # extra m_list entries -> 0 (never selected because target < C).
    x_pad = jnp.pad(x, ((0, n_pad - n), (0, c_pad - c)), constant_values=_NEG)
    tgt_pad = jnp.pad(target.astype(jnp.int32), (0, n_pad - n)).reshape(n_pad, 1)
    m_pad = jnp.pad(m_list.astype(jnp.float32), (0, c_pad - c)).reshape(1, c_pad)

    grid = (n_pad // tile_n,)
    per_sample = pl.pallas_call(
        functools.partial(_ldam_kernel, s=s),
        out_shape=jax.ShapeDtypeStruct((n_pad, 1), jnp.float32),
        grid_spec=pltpu.PrefetchScalarGridSpec(
            num_scalar_prefetch=0,
            grid=grid,
            in_specs=[
                pl.BlockSpec((tile_n, c_pad), lambda i: (i, 0)),
                pl.BlockSpec((tile_n, 1), lambda i: (i, 0)),
                # Constant block index -> m_list DMA'd once, stays VMEM-resident.
                pl.BlockSpec((1, c_pad), lambda i: (0, 0)),
            ],
            out_specs=pl.BlockSpec((tile_n, 1), lambda i: (i, 0)),
        ),
        compiler_params=pltpu.CompilerParams(
            dimension_semantics=("parallel",),
            vmem_limit_bytes=32 * 1024 * 1024,
        ),
    )(x_pad, tgt_pad, m_pad)

    # Mean reduction over the real batch rows (tiny; kept in the wrapper so the
    # grid has no serial accumulator and can shard across TensorCores).
    return jnp.mean(per_sample[:n, 0])


def ldam_loss_ref(x, target, m_list, s=30.0):
    """Pure-JAX reference mirroring the PyTorch module semantics."""
    c = x.shape[1]
    index = jax.nn.one_hot(target, c, dtype=jnp.float32)         # (N, C)
    batch_m = (m_list[None, :] @ index.T).reshape(-1, 1)          # (N, 1)
    output = jnp.where(index.astype(bool), x - batch_m, x)
    logp = jax.nn.log_softmax(s * output, axis=1)
    per_sample = -jnp.take_along_axis(logp, target[:, None], axis=1)[:, 0]
    return jnp.mean(per_sample)


if __name__ == "__main__":
    # Deterministic parameter setup (module __init__): cls_num_list -> m_list.
    num_classes = 16
    batch = 8
    max_m = 0.5
    s = 30.0

    cls_num_list = np.array([500, 400, 300, 200, 150, 100, 80, 60,
                             50, 40, 30, 25, 20, 15, 10, 5], dtype=np.float64)
    m_np = 1.0 / np.sqrt(np.sqrt(cls_num_list))
    m_np = m_np * (max_m / np.max(m_np))
    m_list = jnp.asarray(m_np, dtype=jnp.float32)                 # (C,)

    key = jax.random.PRNGKey(0)
    kx, kt = jax.random.split(key)
    x = jax.random.normal(kx, (batch, num_classes), dtype=jnp.float32)
    target = jax.random.randint(kt, (batch,), 0, num_classes, dtype=jnp.int32)

    loss = ldam_loss_pallas(x, target, m_list, s=s)
    loss = jax.block_until_ready(loss)

    ref = ldam_loss_ref(x, target, m_list, s=s)
    np.testing.assert_allclose(np.asarray(loss), np.asarray(ref), rtol=1e-5, atol=1e-5)

    print("KERNEL_OK")
</pallas_src>

<mosaic_0001>
module attributes {stable_mosaic.version = 11 : i64} {
  func.func @_ldam_kernel(%arg0: i32, %arg1: memref<8x128xf32, #tpu.memory_space<vmem>>, %arg2: memref<8x1xi32, #tpu.memory_space<vmem>>, %arg3: memref<1x128xf32, #tpu.memory_space<vmem>>, %arg4: memref<8x1xf32, #tpu.memory_space<vmem>>) attributes {dimension_semantics = [#tpu.dimension_semantics<parallel>], iteration_bounds = array<i64: 1>, scalar_prefetch = 0 : i64, scratch_operands = 0 : i64, tpu.core_type = #tpu.core_type<tc>, window_params = [{transform_indices = @transform_0, window_bounds = array<i64: 8, 128>}, {transform_indices = @transform_1, window_bounds = array<i64: 8, 1>}, {pipeline_mode = #tpu.pipeline_mode<synchronous>, transform_indices = @transform_2, window_bounds = array<i64: 1, 128>}, {transform_indices = @transform_3, window_bounds = array<i64: 8, 1>}]} {
    %c0 = arith.constant 0 : index
    %c0_0 = arith.constant 0 : index
    %0 = vector.load %arg1[%c0, %c0_0] : memref<8x128xf32, #tpu.memory_space<vmem>>, vector<8x128xf32>
    %c0_1 = arith.constant 0 : index
    %c0_2 = arith.constant 0 : index
    %1 = vector.load %arg2[%c0_1, %c0_2] : memref<8x1xi32, #tpu.memory_space<vmem>>, vector<8x1xi32>
    %c0_3 = arith.constant 0 : index
    %c0_4 = arith.constant 0 : index
    %2 = vector.load %arg3[%c0_3, %c0_4] : memref<1x128xf32, #tpu.memory_space<vmem>>, vector<1x128xf32>
    %3 = tpu.iota {dimensions = array<i32: 1>} : vector<8x128xi32>
    %4 = vector.broadcast %1 : vector<8x1xi32> to vector<8x128xi32>
    %5 = arith.cmpi eq, %3, %4 : vector<8x128xi32>
    %cst = arith.constant 0.000000e+00 : f32
    %6 = vector.shape_cast %2 : vector<1x128xf32> to vector<1x128xf32>
    %7 = vector.broadcast %6 : vector<1x128xf32> to vector<8x128xf32>
    %8 = vector.broadcast %cst : f32 to vector<8x128xf32>
    %9 = arith.select %5, %7, %8 : vector<8x128xi1>, vector<8x128xf32>
    %10 = arith.subf %0, %9 : vector<8x128xf32>
    %cst_5 = arith.constant 3.000000e+01 : f32
    %11 = vector.broadcast %cst_5 : f32 to vector<8x128xf32>
    %12 = arith.mulf %11, %10 : vector<8x128xf32>
    %cst_6 = arith.constant dense<0xFF800000> : vector<8xf32>
    %13 = vector.multi_reduction <maximumf>, %12, %cst_6 [1] : vector<8x128xf32> to vector<8xf32>
    %14 = vector.shape_cast %13 : vector<8xf32> to vector<8x1xf32>
    %15 = vector.broadcast %14 : vector<8x1xf32> to vector<8x128xf32>
    %16 = arith.subf %12, %15 : vector<8x128xf32>
    %17 = math.exp %16 : vector<8x128xf32>
    %cst_7 = arith.constant dense<0.000000e+00> : vector<8xf32>
    %18 = vector.multi_reduction <add>, %17, %cst_7 [1] : vector<8x128xf32> to vector<8xf32>
    %19 = vector.shape_cast %18 : vector<8xf32> to vector<8x1xf32>
    %20 = math.log %19 : vector<8x1xf32>
    %21 = arith.addf %20, %14 : vector<8x1xf32>
    %cst_8 = arith.constant 0.000000e+00 : f32
    %22 = vector.broadcast %cst_8 : f32 to vector<8x128xf32>
    %23 = arith.select %5, %12, %22 : vector<8x128xi1>, vector<8x128xf32>
    %cst_9 = arith.constant dense<0.000000e+00> : vector<8xf32>
    %24 = vector.multi_reduction <add>, %23, %cst_9 [1] : vector<8x128xf32> to vector<8xf32>
    %25 = vector.shape_cast %24 : vector<8xf32> to vector<8x1xf32>
    %26 = arith.subf %21, %25 : vector<8x1xf32>
    %c0_10 = arith.constant 0 : index
    %c0_11 = arith.constant 0 : index
    %27 = vector.load %arg4[%c0_10, %c0_11] : memref<8x1xf32, #tpu.memory_space<vmem>>, vector<8x1xf32>
    tpu.vector_store %arg4[%c0_10, %c0_11], %26 {strides = array<i32>} : memref<8x1xf32, #tpu.memory_space<vmem>>, vector<8x1xf32>,
    return
  }
  func.func @transform_0(%arg0: i32) -> (i32, i32) {
    %c0_i32 = arith.constant 0 : i32
    %c0_i32_0 = arith.constant 0 : i32
    return %arg0, %c0_i32 : i32, i32
  }
  func.func @transform_1(%arg0: i32) -> (i32, i32) {
    %c0_i32 = arith.constant 0 : i32
    %c0_i32_0 = arith.constant 0 : i32
    return %arg0, %c0_i32 : i32, i32
  }
  func.func @transform_2(%arg0: i32) -> (i32, i32) {
    %c0_i32 = arith.constant 0 : i32
    %c0_i32_0 = arith.constant 0 : i32
    %c0_i32_1 = arith.constant 0 : i32
    return %c0_i32, %c0_i32_0 : i32, i32
  }
  func.func @transform_3(%arg0: i32) -> (i32, i32) {
    %c0_i32 = arith.constant 0 : i32
    %c0_i32_0 = arith.constant 0 : i32
    return %arg0, %c0_i32 : i32, i32
  }
}

</mosaic_0001>

<bundles_post_ra>
// kernel: tpu_custom_call.1
= control target key start
LH: loop header
LB: loop body
LE: loop exit
PB: predicated region body
PF: predicated region fallthrough
CT: control target
= control target key end

     0   :  { %v56_v0 = vmov 0   ;;  %v17_v2 = vlaneseq  ;;  %vm43_vm1 = vcmask 7168   ;;  %s89_s1 = inlined_call_operand.vmem [shape: s32[8,1], index: 1, kind: input, shape index: {}]   ;;  %s90_s2 = inlined_call_operand.vmem [shape: f32[1,128], index: 2, kind: input, shape index: {}]   ;;  %s91_s0 = inlined_call_operand.vmem [shape: f32[8,128], index: 0, kind: input, shape index: {}]   ;;  %s92_s3 = inlined_call_operand.vmem [shape: f32[8,1], index: 3, kind: output, shape index: {}]  }
   0x1   :  { %50 = vset.pattern.permute.xlu0 %v56_v0  ;;  %v15_v1 = vld [vmem:[%s89_s1] sm:$0xff] }
   0x2   :  { %20 = vperm.xlu0 %50, %v15_v1   ;;  %v18_v3 = vand.u32 127, %v17_v2  ;;  %v51_v4 = vld [vmem:[%s90_s2] ss:$0 sm:$0xff] }
   0x3   :  { %v14_v6 = vld [vmem:[%s91_s0] sm:$0xff] }
  0x74   :  { %v21_v5 = vpop.permute.xlu0 %20 }
  0x75   :  { %vm22_vm0 = vcmp.eq.s32.totalorder %v18_v3, %v21_v5 }
  0x76   :  { %v26_v7 = vsel %vm22_vm0, %v51_v4, 0.0 }
  0x77   :  { %v27_v8 = vsub.f32 %v14_v6, %v26_v7 }
  0x79   :  { %v28_v9 = vmul.f32 30.0, %v27_v8 }
  0x7b   :  { %29 = vmax.xlane.f32.xlu0 %v28_v9  ;;  %v39_v14 = vsel %vm22_vm0, %v28_v9, 0.0 }
  0xee   :  { %v30_v10 = vpop.xlane.xlu0 %29 }
  0xef   :  { %v31_v11 = vsub.f32 %v28_v9, %v30_v10 }
  0xf1   :  { %v32_v12 = vmul.f32 1.442695, %v31_v11 }
  0xf3   :  { %52 = vpow2.f32 %v32_v12 }
  0xf9   :  { %v53_v13 = vpop.eup %52 }
  0xfa   :  { %34 = vadd.xlane.f32.xlu1 %v53_v13 }
 0x102   :  { %40 = vadd.xlane.f32.xlu1 %v39_v14 }
 0x16d   :  { %v35_v15 = vpop.xlane.xlu1 %34 }
 0x16e   :  { %54 = vlog2.f32 %v35_v15 }
 0x174   :  { %v55_v16 = vpop.eup %54 }
 0x175   :  { %v37_v17 = vmul.f32 0.6931472, %v55_v16  ;;  %v41_v19 = vpop.xlane.xlu1 %40 }
 0x177   :  { %v38_v18 = vadd.f32 %v37_v17, %v30_v10 }
 0x179   :  { %v42_v20 = vsub.f32 %v38_v18, %v41_v19 }
 0x17b   :  { %44 = vst.msk [vmem:[%s92_s3] sm:$0xff] %vm43_vm1, %v42_v20 }

</bundles_post_ra>
